<compile_context>
chip_gen: v5e
topology: v5e:2x2
jax: 0.10.0
libtpu: 0.0.40
codegen_flags: <defaults>
</compile_context>

<pallas_src>
import jax
import jax.numpy as jnp
from jax.experimental import pallas as pl
from jax.experimental.pallas import tpu as pltpu


# ---------------------------------------------------------------------------
# VMEM budgeting (per-generation: 64 MiB/TC on v7x, 128 MiB on v5e/v6e)
# ---------------------------------------------------------------------------

def _vmem_capacity_bytes():
    try:
        return int(pltpu.get_tpu_info().vmem_capacity_bytes)
    except Exception:
        return 64 * 1024 * 1024          # conservative fallback (v7x per-TC)


def _vmem_budget_bytes():
    # Leave ~25% headroom for compiler scratch and the small resident buffers.
    return (_vmem_capacity_bytes() * 3) // 4


def _round_down8(n):
    return (n // 8) * 8


def _pick_batch_tile(batch, f, itemsize, allow_ragged):
    """Largest batch tile whose double-buffered (tb, F) feat tiles fit the budget."""
    budget = _vmem_budget_bytes()
    per_buffer = max(f * itemsize, (budget - (2 << 20)) // 2)   # 2 feat buffers
    cap = max(1, per_buffer // (f * itemsize))
    cap = min(cap, 8192)                  # bigger per-step tiles buy nothing further
    if batch >= 16:
        # Keep at least two grid steps so both v7x TensorCores get a share.
        cap = min(cap, max(8, _round_down8(pl.cdiv(batch, 2))))
    if batch <= cap:
        return batch
    # Prefer the largest multiple-of-8 divisor of B within the cap (clean tiling,
    # no ragged final tile).
    t = _round_down8(cap)
    while t >= 8:
        if batch % t == 0:
            return t
        t -= 8
    if allow_ragged:
        # BlockSpec path: Pallas masks the partial final tile automatically.
        return max(8, _round_down8(cap))
    # TODO(synk): pad ragged batches / emit a masked final tile on the manual-DMA
    # path instead of falling back to a (possibly small) exact divisor.
    for t in range(min(cap, batch), 0, -1):
        if batch % t == 0:
            return t
    return 1


def _pick_f_tile(f, budget):
    """fc2 output-dim tile for the prologue (must be 128-aligned or the full F)."""
    if f % 128 != 0:
        # TODO(synk): very large non-128-aligned F would need padded weight slabs.
        return f
    cap = max(128, budget // (f * 4 * 4))   # 2 weight slabs x double-buffer, f32
    tf = 128
    d = 256
    while d <= min(f, cap):
        if f % d == 0:
            tf = d
        d += 128
    return tf


# ---------------------------------------------------------------------------
# Kernels
# ---------------------------------------------------------------------------

def hyper_weights_kernel(x_ref, w1t_ref, b1_ref, w2et_ref, w2ot_ref,
                         b2e_ref, b2o_ref, cls_ref):
    """Hypernetwork prologue: one (2, tf) column-slab of the generated classifier."""
    # fc1 + ReLU : (1, L) @ (L, F) + (1, F) -> (1, F).  Tiny; recomputed per slab.
    h = jnp.dot(x_ref[...], w1t_ref[...],
                preferred_element_type=jnp.float32) + b1_ref[...]
    h = jnp.maximum(h, 0.0)
    # fc2 split into even/odd output units == columns 0/1 of h_final.view(-1, 2).
    c0 = jnp.dot(h, w2et_ref[...], preferred_element_type=jnp.float32) + b2e_ref[...]
    c1 = jnp.dot(h, w2ot_ref[...], preferred_element_type=jnp.float32) + b2o_ref[...]
    # Plain row stores -- no concatenate / cross-lane relayout.
    cls_ref[0:1, :] = c0
    cls_ref[1:2, :] = c1


def hyper_apply_kernel(feat_ref, cls_ref, out_ref):
    """Auto-pipelined path: (tb, F) CLS rows @ (F, 2) classifier -> (tb, 2)."""
    # feat is the MXU LHS (K=F already in the lane dim) -> no transpose of the big tile.
    out_ref[...] = jnp.dot(feat_ref[...], cls_ref[...],
                           preferred_element_type=jnp.float32)


def hyper_apply_manual_kernel(cls_ref, feat_hbm_ref, out_ref, fbuf, sems):
    """Manual path (F not 128-aligned): cross-iteration double-buffered CLS gather."""
    i = pl.program_id(0)
    nb = pl.num_programs(0)
    tb = fbuf.shape[1]

    def fetch(step, slot):
        # Strided DMA: only feat[step*tb:(step+1)*tb, 0, :] (the CLS token rows).
        pltpu.make_async_copy(
            feat_hbm_ref.at[pl.ds(step * tb, tb), 0, :],
            fbuf.at[slot], sems.at[slot]).start()

    @pl.when(i == 0)
    def _():
        fetch(0, 0)                       # prime slot 0

    slot = i % 2

    # Start the next tile's DMA before blocking on this one (hides DMA latency).
    @pl.when(i + 1 < nb)
    def _():
        fetch(i + 1, 1 - slot)

    pltpu.make_async_copy(
        feat_hbm_ref.at[pl.ds(i * tb, tb), 0, :],
        fbuf.at[slot], sems.at[slot]).wait()

    out_ref[...] = jnp.dot(fbuf[slot], cls_ref[...],
                           preferred_element_type=jnp.float32)


# ---------------------------------------------------------------------------
# Wrappers
# ---------------------------------------------------------------------------

def prepare_hyper_params(w1, b1, w2, b2):
    """One-time parameter re-layout (call at model-load time, not per forward)."""
    f = w1.shape[0]
    return {
        "w1t": w1.T,                       # (L, F)
        "b1":  b1.reshape(1, f),           # (1, F)
        "w2et": w2[0::2, :].T,             # (F, F)  -> classifier column 0
        "w2ot": w2[1::2, :].T,             # (F, F)  -> classifier column 1
        "b2e": b2[0::2].reshape(1, f),     # (1, F)
        "b2o": b2[1::2].reshape(1, f),     # (1, F)
    }


def _generate_classifier(x, params, budget):
    """Run the hypernetwork once; returns the generated classifier as (2, F) f32."""
    L = x.shape[1]
    F = params["w1t"].shape[1]
    tf = _pick_f_tile(F, budget)
    nf = F // tf
    return pl.pallas_call(
        hyper_weights_kernel,
        out_shape=jax.ShapeDtypeStruct((2, F), jnp.float32),
        grid_spec=pltpu.PrefetchScalarGridSpec(
            num_scalar_prefetch=0,
            grid=(nf,),
            in_specs=[
                pl.BlockSpec((1, L), lambda j: (0, 0)),    # x        (resident)
                pl.BlockSpec((L, F), lambda j: (0, 0)),    # w1^T     (resident)
                pl.BlockSpec((1, F), lambda j: (0, 0)),    # b1       (resident)
                pl.BlockSpec((F, tf), lambda j: (0, j)),   # fc2 even-col slab
                pl.BlockSpec((F, tf), lambda j: (0, j)),   # fc2 odd-col slab
                pl.BlockSpec((1, tf), lambda j: (0, j)),   # b2 even slab
                pl.BlockSpec((1, tf), lambda j: (0, j)),   # b2 odd slab
            ],
            out_specs=pl.BlockSpec((2, tf), lambda j: (0, j)),
        ),
        compiler_params=pltpu.CompilerParams(
            dimension_semantics=("arbitrary",),
            vmem_limit_bytes=budget),
    )(x, params["w1t"], params["b1"], params["w2et"], params["w2ot"],
      params["b2e"], params["b2o"])


def _apply_blockspec(feat2d, cls_fk, tb, budget):
    B = feat2d.shape[0]
    F = cls_fk.shape[0]
    nb = pl.cdiv(B, tb)
    itemsize = jnp.dtype(feat2d.dtype).itemsize
    return pl.pallas_call(
        hyper_apply_kernel,
        out_shape=jax.ShapeDtypeStruct((B, 2), jnp.float32),
        grid_spec=pltpu.PrefetchScalarGridSpec(
            num_scalar_prefetch=0,
            grid=(nb,),
            in_specs=[
                # CLS rows of each batch tile: rows [i*tb, (i+1)*tb), first F lanes
                # of the (B, S*F) row-major view.  Auto double-buffered by Pallas.
                pl.BlockSpec((tb, F), lambda i: (i, 0)),
                pl.BlockSpec((F, 2), lambda i: (0, 0)),    # resident classifier
            ],
            out_specs=pl.BlockSpec((tb, 2), lambda i: (i, 0)),
        ),
        compiler_params=pltpu.CompilerParams(
            dimension_semantics=("parallel",),
            vmem_limit_bytes=budget),
        cost_estimate=pl.CostEstimate(
            flops=4 * B * F, transcendentals=0,
            bytes_accessed=B * F * itemsize + 2 * F * itemsize + 2 * B * 4),
    )(feat2d, cls_fk)


def _apply_manual(feat, cls_fk, tb, budget):
    B, S, F = feat.shape
    nb = B // tb
    assert nb * tb == B
    itemsize = jnp.dtype(feat.dtype).itemsize
    return pl.pallas_call(
        hyper_apply_manual_kernel,
        out_shape=jax.ShapeDtypeStruct((B, 2), jnp.float32),
        grid_spec=pltpu.PrefetchScalarGridSpec(
            num_scalar_prefetch=0,
            grid=(nb,),
            in_specs=[
                pl.BlockSpec((F, 2), lambda i: (0, 0)),    # resident classifier
                pl.BlockSpec(memory_space=pl.ANY),         # feat stays in HBM
            ],
            out_specs=pl.BlockSpec((tb, 2), lambda i: (i, 0)),
            scratch_shapes=[
                pltpu.VMEM((2, tb, F), feat.dtype),        # 2-slot CLS-row buffer
                pltpu.SemaphoreType.DMA((2,)),
            ],
        ),
        # The 2-slot buffer carries state across grid steps -> axis must be arbitrary.
        compiler_params=pltpu.CompilerParams(
            dimension_semantics=("arbitrary",),
            vmem_limit_bytes=budget),
        cost_estimate=pl.CostEstimate(
            flops=4 * B * F, transcendentals=0,
            bytes_accessed=B * F * itemsize + 2 * F * itemsize + 2 * B * 4),
    )(cls_fk, feat)


def hyper_classifier(x, feat, params):
    """x: (1, L); feat: (B, S, F); params from prepare_hyper_params.  Returns (B, 2) f32."""
    B, S, F = feat.shape
    budget = _vmem_budget_bytes()

    # 1) Hypernetwork prologue: generated classifier, built lane-dense as (2, F).
    cls = _generate_classifier(x, params, budget)

    # Tiny one-time re-layout outside the batched loop: (F, 2) in feat's dtype, so
    # the apply kernel needs no per-step cast and feat is the untransposed MXU LHS.
    cls_fk = cls.T.astype(feat.dtype)

    # 2) Batched application, gridded over B.
    itemsize = jnp.dtype(feat.dtype).itemsize
    use_blockspec = (F % 128 == 0) or (S == 1)
    tb = _pick_batch_tile(B, F, itemsize, allow_ragged=use_blockspec)

    if use_blockspec:
        # Row-major merge (S, F) -> S*F is free; the CLS rows are the first F lanes
        # of every row, fetched by a plain (auto-pipelined) BlockSpec tile.
        return _apply_blockspec(feat.reshape(B, S * F), cls_fk, tb, budget)
    return _apply_manual(feat, cls_fk, tb, budget)


def reference(x, feat, w1, b1, w2, b2):
    # Pure-JAX mirror of the PyTorch forward (including the literal view(-1, 2)).
    h_in = jax.nn.relu(x @ w1.T + b1)             # (1, F)
    h_final = h_in @ w2.T + b2                    # (1, 2F)
    cls_w = h_final.reshape(-1, 2)                # (F, 2)
    return feat[:, 0, :].astype(jnp.float32) @ cls_w


if __name__ == "__main__":
    key = jax.random.PRNGKey(0)

    def make_case(k, B, S, F, L, feat_dtype=jnp.float32):
        kx, kf, kw1, kb1, kw2, kb2 = jax.random.split(k, 6)
        x = jax.random.normal(kx, (1, L), dtype=jnp.float32)
        feat = jax.random.normal(kf, (B, S, F), dtype=jnp.float32)
        w1 = jax.random.normal(kw1, (F, L), dtype=jnp.float32) * 0.1
        b1 = jax.random.normal(kb1, (F,), dtype=jnp.float32) * 0.1
        w2 = jax.random.normal(kw2, (2 * F, F), dtype=jnp.float32) * 0.1
        b2 = jax.random.normal(kb2, (2 * F,), dtype=jnp.float32) * 0.1
        return x, feat.astype(feat_dtype), (w1, b1, w2, b2)

    k1, k2, k3 = jax.random.split(key, 3)

    # Case 1: module-sized small shapes (F=32 not 128-aligned -> manual-DMA path).
    x, feat, (w1, b1, w2, b2) = make_case(k1, B=2, S=8, F=32, L=8)
    params = prepare_hyper_params(w1, b1, w2, b2)   # one-time re-layout
    out = jax.block_until_ready(hyper_classifier(x, feat, params))
    ref = reference(x, feat, w1, b1, w2, b2)
    assert out.shape == (2, 2), out.shape
    assert jnp.allclose(out, ref, atol=1e-4, rtol=1e-4), (out, ref)

    # Case 2: 128-aligned F -> BlockSpec auto-pipelined path with a multi-tile grid.
    x, feat, (w1, b1, w2, b2) = make_case(k2, B=64, S=4, F=128, L=8)
    params = prepare_hyper_params(w1, b1, w2, b2)
    out = jax.block_until_ready(hyper_classifier(x, feat, params))
    ref = reference(x, feat, w1, b1, w2, b2)
    assert out.shape == (64, 2), out.shape
    assert jnp.allclose(out, ref, atol=1e-4, rtol=1e-4), (out, ref)

    # Case 3: bf16 feat (halves the dominant HBM read; f32 accumulation preserved).
    x, feat, (w1, b1, w2, b2) = make_case(k3, B=64, S=4, F=128, L=8,
                                          feat_dtype=jnp.bfloat16)
    params = prepare_hyper_params(w1, b1, w2, b2)
    out = jax.block_until_ready(hyper_classifier(x, feat, params))
    ref = reference(x, feat.astype(jnp.float32), w1, b1, w2, b2)
    assert jnp.allclose(out, ref, atol=5e-2, rtol=5e-2), (out, ref)

    print("KERNEL_OK")
</pallas_src>

<mosaic_0001>
module attributes {stable_mosaic.version = 11 : i64} {
  func.func @hyper_weights_kernel(%arg0: i32, %arg1: memref<1x8xf32, #tpu.memory_space<vmem>>, %arg2: memref<8x32xf32, #tpu.memory_space<vmem>>, %arg3: memref<1x32xf32, #tpu.memory_space<vmem>>, %arg4: memref<32x32xf32, #tpu.memory_space<vmem>>, %arg5: memref<32x32xf32, #tpu.memory_space<vmem>>, %arg6: memref<1x32xf32, #tpu.memory_space<vmem>>, %arg7: memref<1x32xf32, #tpu.memory_space<vmem>>, %arg8: memref<2x32xf32, #tpu.memory_space<vmem>>) attributes {dimension_semantics = [#tpu.dimension_semantics<arbitrary>], iteration_bounds = array<i64: 1>, scalar_prefetch = 0 : i64, scratch_operands = 0 : i64, tpu.core_type = #tpu.core_type<tc>, window_params = [{pipeline_mode = #tpu.pipeline_mode<synchronous>, transform_indices = @transform_0, window_bounds = array<i64: 1, 8>}, {pipeline_mode = #tpu.pipeline_mode<synchronous>, transform_indices = @transform_1, window_bounds = array<i64: 8, 32>}, {pipeline_mode = #tpu.pipeline_mode<synchronous>, transform_indices = @transform_2, window_bounds = array<i64: 1, 32>}, {transform_indices = @transform_3, window_bounds = array<i64: 32, 32>}, {transform_indices = @transform_4, window_bounds = array<i64: 32, 32>}, {transform_indices = @transform_5, window_bounds = array<i64: 1, 32>}, {transform_indices = @transform_6, window_bounds = array<i64: 1, 32>}, {transform_indices = @transform_7, window_bounds = array<i64: 2, 32>}]} {
    %c0 = arith.constant 0 : index
    %c0_0 = arith.constant 0 : index
    %0 = vector.load %arg1[%c0, %c0_0] : memref<1x8xf32, #tpu.memory_space<vmem>>, vector<1x8xf32>
    %c0_1 = arith.constant 0 : index
    %c0_2 = arith.constant 0 : index
    %1 = vector.load %arg2[%c0_1, %c0_2] : memref<8x32xf32, #tpu.memory_space<vmem>>, vector<8x32xf32>
    %cst = arith.constant dense<0.000000e+00> : vector<1x32xf32>
    %2 = tpu.matmul %0, %1, %cst {dimension_numbers = #tpu.dot_dimension_numbers<[1], [0], [0], [1], [0, 0, 1, 1], [], []>} : vector<1x8xf32>, vector<8x32xf32>, vector<1x32xf32> -> vector<1x32xf32>
    %c0_3 = arith.constant 0 : index
    %c0_4 = arith.constant 0 : index
    %3 = vector.load %arg3[%c0_3, %c0_4] : memref<1x32xf32, #tpu.memory_space<vmem>>, vector<1x32xf32>
    %4 = arith.addf %2, %3 : vector<1x32xf32>
    %cst_5 = arith.constant 0.000000e+00 : f32
    %5 = vector.broadcast %cst_5 : f32 to vector<1x32xf32>
    %6 = arith.maximumf %4, %5 : vector<1x32xf32>
    %c0_6 = arith.constant 0 : index
    %c0_7 = arith.constant 0 : index
    %7 = vector.load %arg4[%c0_6, %c0_7] : memref<32x32xf32, #tpu.memory_space<vmem>>, vector<32x32xf32>
    %cst_8 = arith.constant dense<0.000000e+00> : vector<1x32xf32>
    %8 = tpu.matmul %6, %7, %cst_8 {dimension_numbers = #tpu.dot_dimension_numbers<[1], [0], [0], [1], [0, 0, 1, 1], [], []>} : vector<1x32xf32>, vector<32x32xf32>, vector<1x32xf32> -> vector<1x32xf32>
    %c0_9 = arith.constant 0 : index
    %c0_10 = arith.constant 0 : index
    %9 = vector.load %arg6[%c0_9, %c0_10] : memref<1x32xf32, #tpu.memory_space<vmem>>, vector<1x32xf32>
    %10 = arith.addf %8, %9 : vector<1x32xf32>
    %c0_11 = arith.constant 0 : index
    %c0_12 = arith.constant 0 : index
    %11 = vector.load %arg5[%c0_11, %c0_12] : memref<32x32xf32, #tpu.memory_space<vmem>>, vector<32x32xf32>
    %cst_13 = arith.constant dense<0.000000e+00> : vector<1x32xf32>
    %12 = tpu.matmul %6, %11, %cst_13 {dimension_numbers = #tpu.dot_dimension_numbers<[1], [0], [0], [1], [0, 0, 1, 1], [], []>} : vector<1x32xf32>, vector<32x32xf32>, vector<1x32xf32> -> vector<1x32xf32>
    %c0_14 = arith.constant 0 : index
    %c0_15 = arith.constant 0 : index
    %13 = vector.load %arg7[%c0_14, %c0_15] : memref<1x32xf32, #tpu.memory_space<vmem>>, vector<1x32xf32>
    %14 = arith.addf %12, %13 : vector<1x32xf32>
    %c0_16 = arith.constant 0 : index
    %c0_17 = arith.constant 0 : index
    %15 = vector.load %arg8[%c0_16, %c0_17] : memref<2x32xf32, #tpu.memory_space<vmem>>, vector<1x32xf32>
    tpu.vector_store %arg8[%c0_16, %c0_17], %10 {strides = array<i32>} : memref<2x32xf32, #tpu.memory_space<vmem>>, vector<1x32xf32>,
    %c1 = arith.constant 1 : index
    %c0_18 = arith.constant 0 : index
    %16 = vector.load %arg8[%c1, %c0_18] : memref<2x32xf32, #tpu.memory_space<vmem>>, vector<1x32xf32>
    tpu.vector_store %arg8[%c1, %c0_18], %14 {strides = array<i32>} : memref<2x32xf32, #tpu.memory_space<vmem>>, vector<1x32xf32>,
    return
  }
  func.func @transform_0(%arg0: i32) -> (i32, i32) {
    %c0_i32 = arith.constant 0 : i32
    %c0_i32_0 = arith.constant 0 : i32
    %c0_i32_1 = arith.constant 0 : i32
    return %c0_i32, %c0_i32_0 : i32, i32
  }
  func.func @transform_1(%arg0: i32) -> (i32, i32) {
    %c0_i32 = arith.constant 0 : i32
    %c0_i32_0 = arith.constant 0 : i32
    %c0_i32_1 = arith.constant 0 : i32
    return %c0_i32, %c0_i32_0 : i32, i32
  }
  func.func @transform_2(%arg0: i32) -> (i32, i32) {
    %c0_i32 = arith.constant 0 : i32
    %c0_i32_0 = arith.constant 0 : i32
    %c0_i32_1 = arith.constant 0 : i32
    return %c0_i32, %c0_i32_0 : i32, i32
  }
  func.func @transform_3(%arg0: i32) -> (i32, i32) {
    %c0_i32 = arith.constant 0 : i32
    %c0_i32_0 = arith.constant 0 : i32
    return %c0_i32, %arg0 : i32, i32
  }
  func.func @transform_4(%arg0: i32) -> (i32, i32) {
    %c0_i32 = arith.constant 0 : i32
    %c0_i32_0 = arith.constant 0 : i32
    return %c0_i32, %arg0 : i32, i32
  }
  func.func @transform_5(%arg0: i32) -> (i32, i32) {
    %c0_i32 = arith.constant 0 : i32
    %c0_i32_0 = arith.constant 0 : i32
    return %c0_i32, %arg0 : i32, i32
  }
  func.func @transform_6(%arg0: i32) -> (i32, i32) {
    %c0_i32 = arith.constant 0 : i32
    %c0_i32_0 = arith.constant 0 : i32
    return %c0_i32, %arg0 : i32, i32
  }
  func.func @transform_7(%arg0: i32) -> (i32, i32) {
    %c0_i32 = arith.constant 0 : i32
    %c0_i32_0 = arith.constant 0 : i32
    return %c0_i32, %arg0 : i32, i32
  }
}

</mosaic_0001>

<bundles_post_ra>
// kernel: tpu_custom_call.1
= control target key start
LH: loop header
LB: loop body
LE: loop exit
PB: predicated region body
PF: predicated region fallthrough
CT: control target
= control target key end

     0   :  { %12 = vsyncpa [#allocation3], 0  ;;  %s399_s0 = inlined_call_operand.hbm [shape: f32[1,8], index: 0, kind: input, shape index: {}]   ;;  %s400_s1 = inlined_call_operand.hbm [shape: f32[8,32], index: 1, kind: input, shape index: {}]   ;;  %s401_s2 = inlined_call_operand.vmem [shape: f32[1,32], index: 2, kind: input, shape index: {}]   ;;  %s402_s3 = inlined_call_operand.hbm [shape: f32[32,32], index: 3, kind: input, shape index: {}]   ;;  %s403_s4 = inlined_call_operand.hbm [shape: f32[32,32], index: 4, kind: input, shape index: {}]   ;;  %s404_s5 = inlined_call_operand.vmem [shape: f32[1,32], index: 5, kind: input, shape index: {}]   ;;  %s405_s6 = inlined_call_operand.vmem [shape: f32[1,32], index: 6, kind: input, shape index: {}]   ;;  %s406_s7 = inlined_call_operand.hbm [shape: f32[2,32], index: 7, kind: output, shape index: {}]  }
   0x1   :  { %13 = vsyncpa [#allocation6], 0 }
   0x2   :  { %14 = vsyncpa [#allocation9], 0  ;;  %s32_s26 = sshll.u32 %s400_s1, 4  ;;  %s33_s26 = int_to_ptr.hbm [resolvable:$true] %s32_s26 }
   0x3   :  { %15 = vsyncpa [#allocation4], 0  ;;  %s328_s27 = smov [#allocation5]   ;;  %s21_s8 = sshll.u32 %s399_s0, 4  ;;  %s22_s8 = int_to_ptr.hbm [resolvable:$true] %s21_s8 }
   0x4   :  { %s34_s28 = sshll.u32 %s328_s27, 4  ;;  %s329_s9 = smov [#allocation2]   ;;  %s35_s28 = int_to_ptr.vmem [resolvable:$true] %s34_s28 }
   0x5   :  { %37 = dma.hbm_to_vmem [thread:$0]  %s33_s26, 128, %s35_s28, [#allocation6]  }
   0x6   :  { %s23_s10 = sshll.u32 %s329_s9, 4  ;;  %s44_s13 = sshll.u32 %s402_s3, 4  ;;  %s24_s10 = int_to_ptr.vmem [resolvable:$true] %s23_s10  ;;  %s45_s13 = int_to_ptr.hbm [resolvable:$true] %s44_s13 }
   0x7   :  { %26 = dma.hbm_to_vmem [thread:$0]  %s22_s8, 16, %s24_s10, [#allocation3]  }
   0x8   :  { %s330_s1 = smov [#allocation7]   ;;  %s57_s17 = sshll.u32 %s403_s4, 4  ;;  %s58_s17 = int_to_ptr.hbm [resolvable:$true] %s57_s17 }
   0x9   :  { %s46_s14 = sshll.u32 %s330_s1, 4  ;;  %s331_s18 = smov 128   ;;  %s47_s14 = int_to_ptr.vmem [resolvable:$true] %s46_s14 }
   0xa   :  { %s332_s0 = smov 8   ;;  %s333_s19 = smov [#allocation8]  }
   0xb   :  { %52 = dma.hbm_to_vmem [thread:$0]  %s45_s13, 512, %s47_s14, [#allocation6], %s331_s18, %s331_s18, %s332_s0  }
   0xc   :  { %s59_s20 = sshll.u32 %s333_s19, 4  ;;  %s60_s20 = int_to_ptr.vmem [resolvable:$true] %s59_s20 }
   0xd   :  { %65 = dma.hbm_to_vmem [thread:$0]  %s58_s17, 512, %s60_s20, [#allocation9], %s331_s18, %s331_s18, %s332_s0  }
   0xe   :  { %320 = dma.done.wait [#allocation3], 16  }
   0xf   :  { %321 = vsyncadd [#allocation3], 4294967280 }
  0x10   :  { %322 = dma.done.wait [#allocation6], 640  }
  0x11   :  { %323 = vsyncadd [#allocation6], 4294966656 }
  0x12   :  { %324 = dma.done.wait [#allocation9], 512  }
  0x13   :  { %325 = vsyncadd [#allocation9], 4294966784  ;;  %vm89_vm0 = vcmask 64512   ;;  %v87_v0 = vld [vmem:[#allocation5] sm:$0xff]  ;;  %v86_v1 = vld [vmem:[#allocation2] sm:$0x1] }
  0x14   :  { %v117_v2 = vld [vmem:[#allocation7 + $0x18] sm:$0xff]  ;;  %108 = vmatpush.msra.mxu0 %v87_v0  ;;  %v116_v4 = vld [vmem:[#allocation7 + $0x10] sm:$0xff]  ;;  %v115_v6 = vld [vmem:[#allocation7 + $0x8] sm:$0xff]  ;;  %vm119_vm1 = vcmask 261120   ;;  %vm168_vm2 = vcmask 253952   ;;  %s334_s25 = smov [#allocation10]  }
  0x15   :  { %135 = vmatpush.msra.mxu1 %v117_v2  ;;  %v146_v3 = vld [vmem:[#allocation8 + $0x18] sm:$0xff]  ;;  %190 = vmatmul.msk.f32.vlgmr.msra.gmra.mxu0 %vm89_vm0, %v86_v1  ;;  %v145_v5 = vld [vmem:[#allocation8 + $0x10] sm:$0xff]  ;;  %v144_v7 = vld [vmem:[#allocation8 + $0x8] sm:$0xff]  ;;  %s178_s28 = sshll.u32 %s406_s7, 4  ;;  %s179_s28 = int_to_ptr.hbm [resolvable:$true] %s178_s28 }
  0x16   :  { %160 = vmatpush.msra.mxu2 %v146_v3  ;;  %v114_v8 = vld [vmem:[#allocation7] sm:$0xff]  ;;  %v88_v10 = vld [vmem:[%s401_s2] sm:$0x1]  ;;  %s176_s2 = sshll.u32 %s334_s25, 4  ;;  %s177_s2 = int_to_ptr.vmem [resolvable:$true] %s176_s2 }
  0x17   :  { %136 = vmatpush.msra.mxu1 %v116_v4  ;;  %v143_v9 = vld [vmem:[#allocation8] sm:$0xff]  ;;  %v118_v14 = vld [vmem:[%s404_s5] sm:$0x1] }
  0x18   :  { %161 = vmatpush.msra.mxu2 %v145_v5  ;;  %v147_v17 = vld [vmem:[%s405_s6] sm:$0x1] }
  0x19   :  { %137 = vmatpush.msra.mxu1 %v115_v6 }
  0x1a   :  { %162 = vmatpush.msra.mxu2 %v144_v7 }
  0x1b   :  { %138 = vmatpush.msra.mxu1 %v114_v8 }
  0x1c   :  { %163 = vmatpush.msra.mxu2 %v143_v9 }
  0x92   :  { %v110_v11 = vpop.f32.mrf.mxu0 }
  0x93   :  { %v111_v12 = vadd.f32 %v110_v11, %v88_v10 }
  0x95   :  { %v113_v13 = vmax.f32 %v111_v12, 0.0 }
  0x97   :  { %191 = vmatmul.msk.f32.vlgmr.msra.gmra.mxu1 %vm119_vm1, %v113_v13  ;;  %192 = vmatmul.msk.f32.vlgmr.msra.gmra.mxu2 %vm119_vm1, %v113_v13 }
 0x114   :  { %v140_v15 = vpop.f32.mrf.mxu1 }
 0x115   :  { %v141_v16 = vadd.f32 %v140_v15, %v118_v14 }
 0x117   :  { %169 = vst.msk [vmem:[#allocation10] sm:$0x1] %vm168_vm2, %v141_v16 }
 0x11a   :  { %v165_v18 = vpop.f32.mrf.mxu2 }
 0x11b   :  { %v166_v19 = vadd.f32 %v165_v18, %v147_v17 }
 0x11d   :  { %170 = vst.msk [vmem:[#allocation10 + $0x1] sm:$0x1] %vm168_vm2, %v166_v19 }
 0x11e   :  { %181 = dma.vmem_to_hbm [thread:$0]  %s177_s2, 32, %s179_s28, [#allocation4]  }
 0x11f   :  { %326 = dma.done.wait [#allocation4], 32  }
 0x120   :  { %327 = vsyncadd [#allocation4], 4294967264 }
 0x121   :  { %186 = vsyncpa [#allocation3], 1 }
 0x122   :  { %187 = vsyncpa [#allocation6], 1 }
 0x123   :  { %188 = vsyncpa [#allocation9], 1 }
 0x124   :  { %189 = vsyncpa [#allocation4], 1 }

</bundles_post_ra>
